<compile_context>
chip_gen: v7x
topology: tpu7x:2x2x1
jax: 0.10.0
libtpu: 0.0.40
codegen_flags: <defaults>
</compile_context>

<pallas_src>
import jax
import jax.numpy as jnp
from jax.experimental import pallas as pl
from jax.experimental.pallas import tpu as pltpu


def _round_up(x, m):
    return (x + m - 1) // m * m


def _make_gather_kernel(tile_n, n_pad, staged):
    """Row-gather kernel over the combined [centers; contexts] index list."""

    def kernel(idx_ref, in_tab, out_tab, o_ref, *scratch):
        t = pl.program_id(0)              # 0 -> in_emb rows, 1 -> out_emb rows
        j = pl.program_id(1)              # tile within that half
        base = t * n_pad + j * tile_n     # offset into the flat index list

        def gather(tab):
            if staged:
                # Tables are VMEM-resident (staged once by Pallas since their
                # block index never changes): plain dynamic row reads.
                for i in range(tile_n):
                    r = idx_ref[base + i]
                    o_ref[pl.ds(i, 1), :] = tab[pl.ds(r, 1), :]
            else:
                # Tables stay in HBM: one row DMA per gathered row into the
                # output VMEM block.  All starts are issued before any wait so
                # the (tile-bounded) row latencies overlap; a single shared
                # DMA semaphore counts completions.
                sem = scratch[0]
                copies = []
                for i in range(tile_n):
                    r = idx_ref[base + i]
                    cp = pltpu.make_async_copy(
                        tab.at[pl.ds(r, 1), :],
                        o_ref.at[pl.ds(i, 1), :],
                        sem.at[0])
                    cp.start()
                    copies.append(cp)
                for cp in copies:
                    cp.wait()

        @pl.when(t == 0)
        def _():
            gather(in_tab)

        @pl.when(t == 1)
        def _():
            gather(out_tab)

    return kernel


def skip_gram_forward(centers, contexts, in_emb, out_emb, *,
                      tile_n=None, vmem_table_budget_bytes=8 * 1024 * 1024):
    """Pallas equivalent of skip_gram.forward: (in_emb[centers], out_emb[contexts]).

    centers / contexts may be shaped (1, n) (the module's .squeeze(0) is
    applied here) or (n,).  in_emb / out_emb are (vocab, embed) tables.
    """
    centers = jnp.asarray(centers, jnp.int32).reshape(-1)
    contexts = jnp.asarray(contexts, jnp.int32).reshape(-1)
    if centers.shape[0] != contexts.shape[0]:
        raise ValueError("centers and contexts must have the same length")
    n = centers.shape[0]
    vocab, embed = in_emb.shape
    assert out_emb.shape == (vocab, embed)
    dtype = in_emb.dtype
    if out_emb.dtype != dtype:
        out_emb = out_emb.astype(dtype)

    # Lane-dense layout: pad embed to a multiple of 128.
    embed_p = _round_up(embed, 128)
    if embed_p != embed:
        pad = ((0, 0), (0, embed_p - embed))
        in_tab = jnp.pad(in_emb, pad)
        out_tab = jnp.pad(out_emb, pad)
    else:
        in_tab, out_tab = in_emb, out_emb

    # Tile over n: bounds in-flight DMAs / unroll and output VMEM, and lets
    # Pallas overlap the writeback of one tile with the gather of the next.
    if tile_n is None:
        tile_n = min(64, _round_up(n, 8))
    tile_n = _round_up(max(int(tile_n), 8), 8)
    n_pad = _round_up(n, tile_n)
    n_tiles = n_pad // tile_n

    # Coalesced, clamped, padded index list (padding rows gather row 0 and are
    # sliced off below).
    pad_n = n_pad - n
    c_idx = jnp.pad(jnp.clip(centers, 0, vocab - 1), (0, pad_n))
    t_idx = jnp.pad(jnp.clip(contexts, 0, vocab - 1), (0, pad_n))
    idx = jnp.concatenate([c_idx, t_idx])            # (2 * n_pad,) int32 -> SMEM

    table_bytes = 2 * vocab * embed_p * jnp.dtype(dtype).itemsize
    staged = table_bytes <= vmem_table_budget_bytes

    if staged:
        # Small-vocab fast path: one big DMA per table into VMEM beats many
        # tiny per-row DMAs.
        table_spec = pl.BlockSpec((vocab, embed_p), lambda t, j, idx: (0, 0))
        scratch = []
    else:
        # Large-vocab path: tables never leave HBM; only gathered rows move.
        table_spec = pl.BlockSpec(memory_space=pl.ANY)
        scratch = [pltpu.SemaphoreType.DMA((1,))]

    kernel = _make_gather_kernel(tile_n, n_pad, staged)

    grid_spec = pltpu.PrefetchScalarGridSpec(
        num_scalar_prefetch=1,                       # idx -> SMEM
        grid=(2, n_tiles),                           # (table, tile), independent
        in_specs=[table_spec, table_spec],
        out_specs=pl.BlockSpec((tile_n, embed_p),
                               lambda t, j, idx: (t * n_tiles + j, 0)),
        scratch_shapes=scratch,
    )

    out = pl.pallas_call(
        kernel,
        grid_spec=grid_spec,
        out_shape=jax.ShapeDtypeStruct((2 * n_pad, embed_p), dtype),
        compiler_params=pltpu.CompilerParams(
            dimension_semantics=("parallel", "parallel")),
    )(idx, in_tab, out_tab)

    v = out[:n, :embed]
    u_pos = out[n_pad:n_pad + n, :embed]
    return v, u_pos


if __name__ == "__main__":
    # TODO(synk): sample_neg / neg_sample_loss rely on pandas CSV loading and
    # torch.multinomial negative sampling and are not part of forward(); they
    # are intentionally not reproduced here.
    key = jax.random.PRNGKey(0)
    k_in, k_out, k_c, k_t = jax.random.split(key, 4)

    vocab_size, embed_size, n_context = 256, 128, 8

    # nn.Embedding weights, .uniform_(-1, 1)
    in_emb = jax.random.uniform(k_in, (vocab_size, embed_size),
                                dtype=jnp.float32, minval=-1.0, maxval=1.0)
    out_emb = jax.random.uniform(k_out, (vocab_size, embed_size),
                                 dtype=jnp.float32, minval=-1.0, maxval=1.0)

    # Index tensors shaped (1, n_context), as implied by .squeeze(0).
    centers = jax.random.randint(k_c, (1, n_context), 0, vocab_size,
                                 dtype=jnp.int32)
    contexts = jax.random.randint(k_t, (1, n_context), 0, vocab_size,
                                  dtype=jnp.int32)

    # 1) Small-vocab config -> VMEM-staged fast path.
    v, u_pos = skip_gram_forward(centers, contexts, in_emb, out_emb)
    jax.block_until_ready((v, u_pos))
    assert v.shape == (n_context, embed_size)
    assert u_pos.shape == (n_context, embed_size)
    assert jnp.allclose(v, in_emb[centers[0]])
    assert jnp.allclose(u_pos, out_emb[contexts[0]])

    # 2) Same tables through the HBM-resident path (forced), with several
    #    tiles and n not a multiple of the tile, to exercise tiling/padding.
    n2 = 40
    centers2 = jax.random.randint(jax.random.PRNGKey(1), (1, n2), 0,
                                  vocab_size, dtype=jnp.int32)
    contexts2 = jax.random.randint(jax.random.PRNGKey(2), (1, n2), 0,
                                   vocab_size, dtype=jnp.int32)
    v2, u2 = skip_gram_forward(centers2, contexts2, in_emb, out_emb,
                               tile_n=16, vmem_table_budget_bytes=0)
    jax.block_until_ready((v2, u2))
    assert v2.shape == (n2, embed_size)
    assert u2.shape == (n2, embed_size)
    assert jnp.allclose(v2, in_emb[centers2[0]])
    assert jnp.allclose(u2, out_emb[contexts2[0]])

    print("KERNEL_OK")
</pallas_src>

<mosaic_0001>
module attributes {stable_mosaic.version = 11 : i64} {
  func.func @kernel(%arg0: i32, %arg1: i32, %arg2: memref<16xi32, #tpu.memory_space<smem>>, %arg3: memref<256x128xf32, #tpu.memory_space<vmem>>, %arg4: memref<256x128xf32, #tpu.memory_space<vmem>>, %arg5: memref<8x128xf32, #tpu.memory_space<vmem>>) attributes {dimension_semantics = [#tpu.dimension_semantics<parallel>, #tpu.dimension_semantics<parallel>], iteration_bounds = array<i64: 2, 1>, scalar_prefetch = 1 : i64, scratch_operands = 0 : i64, tpu.core_type = #tpu.core_type<tc>, window_params = [{pipeline_mode = #tpu.pipeline_mode<synchronous>, transform_indices = @transform_0, window_bounds = array<i64: 256, 128>}, {pipeline_mode = #tpu.pipeline_mode<synchronous>, transform_indices = @transform_1, window_bounds = array<i64: 256, 128>}, {transform_indices = @transform_2, window_bounds = array<i64: 8, 128>}]} {
    %c8_i32 = arith.constant 8 : i32
    %0 = arith.muli %arg0, %c8_i32 : i32
    %c8_i32_0 = arith.constant 8 : i32
    %1 = arith.muli %arg1, %c8_i32_0 : i32
    %2 = arith.addi %0, %1 : i32
    %c0_i32 = arith.constant 0 : i32
    %3 = arith.cmpi eq, %arg0, %c0_i32 : i32
    %4 = arith.extui %3 : i1 to i32
    %c0_i32_1 = arith.constant 0 : i32
    %5 = arith.cmpi ne, %4, %c0_i32_1 : i32
    scf.if %5 {
      %c0_i32_3 = arith.constant 0 : i32
      %9 = arith.addi %2, %c0_i32_3 : i32
      %10 = arith.index_cast %9 : i32 to index
      %11 = memref.load %arg2[%10] : memref<16xi32, #tpu.memory_space<smem>>
      %12 = arith.index_cast %11 : i32 to index
      %c0 = arith.constant 0 : index
      %13 = vector.load %arg3[%12, %c0] : memref<256x128xf32, #tpu.memory_space<vmem>>, vector<1x128xf32>
      %c0_4 = arith.constant 0 : index
      %c0_5 = arith.constant 0 : index
      %14 = vector.load %arg5[%c0_4, %c0_5] : memref<8x128xf32, #tpu.memory_space<vmem>>, vector<1x128xf32>
      tpu.vector_store %arg5[%c0_4, %c0_5], %13 {strides = array<i32>} : memref<8x128xf32, #tpu.memory_space<vmem>>, vector<1x128xf32>,
      %c1_i32_6 = arith.constant 1 : i32
      %15 = arith.addi %2, %c1_i32_6 : i32
      %16 = arith.index_cast %15 : i32 to index
      %17 = memref.load %arg2[%16] : memref<16xi32, #tpu.memory_space<smem>>
      %18 = arith.index_cast %17 : i32 to index
      %c0_7 = arith.constant 0 : index
      %19 = vector.load %arg3[%18, %c0_7] : memref<256x128xf32, #tpu.memory_space<vmem>>, vector<1x128xf32>
      %c1 = arith.constant 1 : index
      %c0_8 = arith.constant 0 : index
      %20 = vector.load %arg5[%c1, %c0_8] : memref<8x128xf32, #tpu.memory_space<vmem>>, vector<1x128xf32>
      tpu.vector_store %arg5[%c1, %c0_8], %19 {strides = array<i32>} : memref<8x128xf32, #tpu.memory_space<vmem>>, vector<1x128xf32>,
      %c2_i32 = arith.constant 2 : i32
      %21 = arith.addi %2, %c2_i32 : i32
      %22 = arith.index_cast %21 : i32 to index
      %23 = memref.load %arg2[%22] : memref<16xi32, #tpu.memory_space<smem>>
      %24 = arith.index_cast %23 : i32 to index
      %c0_9 = arith.constant 0 : index
      %25 = vector.load %arg3[%24, %c0_9] : memref<256x128xf32, #tpu.memory_space<vmem>>, vector<1x128xf32>
      %c2 = arith.constant 2 : index
      %c0_10 = arith.constant 0 : index
      %26 = vector.load %arg5[%c2, %c0_10] : memref<8x128xf32, #tpu.memory_space<vmem>>, vector<1x128xf32>
      tpu.vector_store %arg5[%c2, %c0_10], %25 {strides = array<i32>} : memref<8x128xf32, #tpu.memory_space<vmem>>, vector<1x128xf32>,
      %c3_i32 = arith.constant 3 : i32
      %27 = arith.addi %2, %c3_i32 : i32
      %28 = arith.index_cast %27 : i32 to index
      %29 = memref.load %arg2[%28] : memref<16xi32, #tpu.memory_space<smem>>
      %30 = arith.index_cast %29 : i32 to index
      %c0_11 = arith.constant 0 : index
      %31 = vector.load %arg3[%30, %c0_11] : memref<256x128xf32, #tpu.memory_space<vmem>>, vector<1x128xf32>
      %c3 = arith.constant 3 : index
      %c0_12 = arith.constant 0 : index
      %32 = vector.load %arg5[%c3, %c0_12] : memref<8x128xf32, #tpu.memory_space<vmem>>, vector<1x128xf32>
      tpu.vector_store %arg5[%c3, %c0_12], %31 {strides = array<i32>} : memref<8x128xf32, #tpu.memory_space<vmem>>, vector<1x128xf32>,
      %c4_i32 = arith.constant 4 : i32
      %33 = arith.addi %2, %c4_i32 : i32
      %34 = arith.index_cast %33 : i32 to index
      %35 = memref.load %arg2[%34] : memref<16xi32, #tpu.memory_space<smem>>
      %36 = arith.index_cast %35 : i32 to index
      %c0_13 = arith.constant 0 : index
      %37 = vector.load %arg3[%36, %c0_13] : memref<256x128xf32, #tpu.memory_space<vmem>>, vector<1x128xf32>
      %c4 = arith.constant 4 : index
      %c0_14 = arith.constant 0 : index
      %38 = vector.load %arg5[%c4, %c0_14] : memref<8x128xf32, #tpu.memory_space<vmem>>, vector<1x128xf32>
      tpu.vector_store %arg5[%c4, %c0_14], %37 {strides = array<i32>} : memref<8x128xf32, #tpu.memory_space<vmem>>, vector<1x128xf32>,
      %c5_i32 = arith.constant 5 : i32
      %39 = arith.addi %2, %c5_i32 : i32
      %40 = arith.index_cast %39 : i32 to index
      %41 = memref.load %arg2[%40] : memref<16xi32, #tpu.memory_space<smem>>
      %42 = arith.index_cast %41 : i32 to index
      %c0_15 = arith.constant 0 : index
      %43 = vector.load %arg3[%42, %c0_15] : memref<256x128xf32, #tpu.memory_space<vmem>>, vector<1x128xf32>
      %c5 = arith.constant 5 : index
      %c0_16 = arith.constant 0 : index
      %44 = vector.load %arg5[%c5, %c0_16] : memref<8x128xf32, #tpu.memory_space<vmem>>, vector<1x128xf32>
      tpu.vector_store %arg5[%c5, %c0_16], %43 {strides = array<i32>} : memref<8x128xf32, #tpu.memory_space<vmem>>, vector<1x128xf32>,
      %c6_i32 = arith.constant 6 : i32
      %45 = arith.addi %2, %c6_i32 : i32
      %46 = arith.index_cast %45 : i32 to index
      %47 = memref.load %arg2[%46] : memref<16xi32, #tpu.memory_space<smem>>
      %48 = arith.index_cast %47 : i32 to index
      %c0_17 = arith.constant 0 : index
      %49 = vector.load %arg3[%48, %c0_17] : memref<256x128xf32, #tpu.memory_space<vmem>>, vector<1x128xf32>
      %c6 = arith.constant 6 : index
      %c0_18 = arith.constant 0 : index
      %50 = vector.load %arg5[%c6, %c0_18] : memref<8x128xf32, #tpu.memory_space<vmem>>, vector<1x128xf32>
      tpu.vector_store %arg5[%c6, %c0_18], %49 {strides = array<i32>} : memref<8x128xf32, #tpu.memory_space<vmem>>, vector<1x128xf32>,
      %c7_i32 = arith.constant 7 : i32
      %51 = arith.addi %2, %c7_i32 : i32
      %52 = arith.index_cast %51 : i32 to index
      %53 = memref.load %arg2[%52] : memref<16xi32, #tpu.memory_space<smem>>
      %54 = arith.index_cast %53 : i32 to index
      %c0_19 = arith.constant 0 : index
      %55 = vector.load %arg3[%54, %c0_19] : memref<256x128xf32, #tpu.memory_space<vmem>>, vector<1x128xf32>
      %c7 = arith.constant 7 : index
      %c0_20 = arith.constant 0 : index
      %56 = vector.load %arg5[%c7, %c0_20] : memref<8x128xf32, #tpu.memory_space<vmem>>, vector<1x128xf32>
      tpu.vector_store %arg5[%c7, %c0_20], %55 {strides = array<i32>} : memref<8x128xf32, #tpu.memory_space<vmem>>, vector<1x128xf32>,
    } else {
    }
    %c1_i32 = arith.constant 1 : i32
    %6 = arith.cmpi eq, %arg0, %c1_i32 : i32
    %7 = arith.extui %6 : i1 to i32
    %c0_i32_2 = arith.constant 0 : i32
    %8 = arith.cmpi ne, %7, %c0_i32_2 : i32
    scf.if %8 {
      %c0_i32_3 = arith.constant 0 : i32
      %9 = arith.addi %2, %c0_i32_3 : i32
      %10 = arith.index_cast %9 : i32 to index
      %11 = memref.load %arg2[%10] : memref<16xi32, #tpu.memory_space<smem>>
      %12 = arith.index_cast %11 : i32 to index
      %c0 = arith.constant 0 : index
      %13 = vector.load %arg4[%12, %c0] : memref<256x128xf32, #tpu.memory_space<vmem>>, vector<1x128xf32>
      %c0_4 = arith.constant 0 : index
      %c0_5 = arith.constant 0 : index
      %14 = vector.load %arg5[%c0_4, %c0_5] : memref<8x128xf32, #tpu.memory_space<vmem>>, vector<1x128xf32>
      tpu.vector_store %arg5[%c0_4, %c0_5], %13 {strides = array<i32>} : memref<8x128xf32, #tpu.memory_space<vmem>>, vector<1x128xf32>,
      %c1_i32_6 = arith.constant 1 : i32
      %15 = arith.addi %2, %c1_i32_6 : i32
      %16 = arith.index_cast %15 : i32 to index
      %17 = memref.load %arg2[%16] : memref<16xi32, #tpu.memory_space<smem>>
      %18 = arith.index_cast %17 : i32 to index
      %c0_7 = arith.constant 0 : index
      %19 = vector.load %arg4[%18, %c0_7] : memref<256x128xf32, #tpu.memory_space<vmem>>, vector<1x128xf32>
      %c1 = arith.constant 1 : index
      %c0_8 = arith.constant 0 : index
      %20 = vector.load %arg5[%c1, %c0_8] : memref<8x128xf32, #tpu.memory_space<vmem>>, vector<1x128xf32>
      tpu.vector_store %arg5[%c1, %c0_8], %19 {strides = array<i32>} : memref<8x128xf32, #tpu.memory_space<vmem>>, vector<1x128xf32>,
      %c2_i32 = arith.constant 2 : i32
      %21 = arith.addi %2, %c2_i32 : i32
      %22 = arith.index_cast %21 : i32 to index
      %23 = memref.load %arg2[%22] : memref<16xi32, #tpu.memory_space<smem>>
      %24 = arith.index_cast %23 : i32 to index
      %c0_9 = arith.constant 0 : index
      %25 = vector.load %arg4[%24, %c0_9] : memref<256x128xf32, #tpu.memory_space<vmem>>, vector<1x128xf32>
      %c2 = arith.constant 2 : index
      %c0_10 = arith.constant 0 : index
      %26 = vector.load %arg5[%c2, %c0_10] : memref<8x128xf32, #tpu.memory_space<vmem>>, vector<1x128xf32>
      tpu.vector_store %arg5[%c2, %c0_10], %25 {strides = array<i32>} : memref<8x128xf32, #tpu.memory_space<vmem>>, vector<1x128xf32>,
      %c3_i32 = arith.constant 3 : i32
      %27 = arith.addi %2, %c3_i32 : i32
      %28 = arith.index_cast %27 : i32 to index
      %29 = memref.load %arg2[%28] : memref<16xi32, #tpu.memory_space<smem>>
      %30 = arith.index_cast %29 : i32 to index
      %c0_11 = arith.constant 0 : index
      %31 = vector.load %arg4[%30, %c0_11] : memref<256x128xf32, #tpu.memory_space<vmem>>, vector<1x128xf32>
      %c3 = arith.constant 3 : index
      %c0_12 = arith.constant 0 : index
      %32 = vector.load %arg5[%c3, %c0_12] : memref<8x128xf32, #tpu.memory_space<vmem>>, vector<1x128xf32>
      tpu.vector_store %arg5[%c3, %c0_12], %31 {strides = array<i32>} : memref<8x128xf32, #tpu.memory_space<vmem>>, vector<1x128xf32>,
      %c4_i32 = arith.constant 4 : i32
      %33 = arith.addi %2, %c4_i32 : i32
      %34 = arith.index_cast %33 : i32 to index
      %35 = memref.load %arg2[%34] : memref<16xi32, #tpu.memory_space<smem>>
      %36 = arith.index_cast %35 : i32 to index
      %c0_13 = arith.constant 0 : index
      %37 = vector.load %arg4[%36, %c0_13] : memref<256x128xf32, #tpu.memory_space<vmem>>, vector<1x128xf32>
      %c4 = arith.constant 4 : index
      %c0_14 = arith.constant 0 : index
      %38 = vector.load %arg5[%c4, %c0_14] : memref<8x128xf32, #tpu.memory_space<vmem>>, vector<1x128xf32>
      tpu.vector_store %arg5[%c4, %c0_14], %37 {strides = array<i32>} : memref<8x128xf32, #tpu.memory_space<vmem>>, vector<1x128xf32>,
      %c5_i32 = arith.constant 5 : i32
      %39 = arith.addi %2, %c5_i32 : i32
      %40 = arith.index_cast %39 : i32 to index
      %41 = memref.load %arg2[%40] : memref<16xi32, #tpu.memory_space<smem>>
      %42 = arith.index_cast %41 : i32 to index
      %c0_15 = arith.constant 0 : index
      %43 = vector.load %arg4[%42, %c0_15] : memref<256x128xf32, #tpu.memory_space<vmem>>, vector<1x128xf32>
      %c5 = arith.constant 5 : index
      %c0_16 = arith.constant 0 : index
      %44 = vector.load %arg5[%c5, %c0_16] : memref<8x128xf32, #tpu.memory_space<vmem>>, vector<1x128xf32>
      tpu.vector_store %arg5[%c5, %c0_16], %43 {strides = array<i32>} : memref<8x128xf32, #tpu.memory_space<vmem>>, vector<1x128xf32>,
      %c6_i32 = arith.constant 6 : i32
      %45 = arith.addi %2, %c6_i32 : i32
      %46 = arith.index_cast %45 : i32 to index
      %47 = memref.load %arg2[%46] : memref<16xi32, #tpu.memory_space<smem>>
      %48 = arith.index_cast %47 : i32 to index
      %c0_17 = arith.constant 0 : index
      %49 = vector.load %arg4[%48, %c0_17] : memref<256x128xf32, #tpu.memory_space<vmem>>, vector<1x128xf32>
      %c6 = arith.constant 6 : index
      %c0_18 = arith.constant 0 : index
      %50 = vector.load %arg5[%c6, %c0_18] : memref<8x128xf32, #tpu.memory_space<vmem>>, vector<1x128xf32>
      tpu.vector_store %arg5[%c6, %c0_18], %49 {strides = array<i32>} : memref<8x128xf32, #tpu.memory_space<vmem>>, vector<1x128xf32>,
      %c7_i32 = arith.constant 7 : i32
      %51 = arith.addi %2, %c7_i32 : i32
      %52 = arith.index_cast %51 : i32 to index
      %53 = memref.load %arg2[%52] : memref<16xi32, #tpu.memory_space<smem>>
      %54 = arith.index_cast %53 : i32 to index
      %c0_19 = arith.constant 0 : index
      %55 = vector.load %arg4[%54, %c0_19] : memref<256x128xf32, #tpu.memory_space<vmem>>, vector<1x128xf32>
      %c7 = arith.constant 7 : index
      %c0_20 = arith.constant 0 : index
      %56 = vector.load %arg5[%c7, %c0_20] : memref<8x128xf32, #tpu.memory_space<vmem>>, vector<1x128xf32>
      tpu.vector_store %arg5[%c7, %c0_20], %55 {strides = array<i32>} : memref<8x128xf32, #tpu.memory_space<vmem>>, vector<1x128xf32>,
    } else {
    }
    return
  }
  func.func @transform_0(%arg0: i32, %arg1: i32, %arg2: memref<16xi32, #tpu.memory_space<smem>>) -> (i32, i32) {
    %c0_i32 = arith.constant 0 : i32
    %c0_i32_0 = arith.constant 0 : i32
    %c0_i32_1 = arith.constant 0 : i32
    return %c0_i32, %c0_i32_0 : i32, i32
  }
  func.func @transform_1(%arg0: i32, %arg1: i32, %arg2: memref<16xi32, #tpu.memory_space<smem>>) -> (i32, i32) {
    %c0_i32 = arith.constant 0 : i32
    %c0_i32_0 = arith.constant 0 : i32
    %c0_i32_1 = arith.constant 0 : i32
    return %c0_i32, %c0_i32_0 : i32, i32
  }
  func.func @transform_2(%arg0: i32, %arg1: i32, %arg2: memref<16xi32, #tpu.memory_space<smem>>) -> (i32, i32) {
    %c1_i32 = arith.constant 1 : i32
    %0 = arith.muli %arg0, %c1_i32 : i32
    %1 = arith.addi %0, %arg1 : i32
    %c0_i32 = arith.constant 0 : i32
    %c0_i32_0 = arith.constant 0 : i32
    return %1, %c0_i32 : i32, i32
  }
}

</mosaic_0001>

<bundles_post_ra>
// kernel: tpu_custom_call.1
= control target key start
LH: loop header
LB: loop body
LE: loop exit
PB: predicated region body
PF: predicated region fallthrough
CT: control target
= control target key end

     0   :  { %s879_s0 = inlined_call_operand.hbm [shape: s32[16], index: 0, kind: input, shape index: {}]   ;;  %s880_s1 = inlined_call_operand.hbm [shape: f32[256,128], index: 1, kind: input, shape index: {}]   ;;  %s881_s2 = inlined_call_operand.hbm [shape: f32[256,128], index: 2, kind: input, shape index: {}]   ;;  %s882_s3 = inlined_call_operand.hbm [shape: f32[16,128], index: 3, kind: output, shape index: {}]  }
   0x1   :  { %s465_s14 = scalar_lea.hbm %s879_s0, 16 }
   0x2   :  { %p466_p0 = scmp.ne.s32.totalorder %s879_s0, %s465_s14  ;;  %p469_p1 = scmp.lt.u32.totalorder %s465_s14, %s879_s0 }
   0x4   :  { %p471_p2 = pnand %p469_p1, %p466_p0 }
   0x6   :  { %474 = shalt.err (!%p471_p2)  }
   0x7   :  { %s621_s19 = smov [#allocation3]  }
   0x8   :  { %9 = dma.hbm_to_smem %s879_s0, 16, %s621_s19, [#allocation2] }
   0x9   :  { %583 = dma.done.wait [#allocation2], 16 }
   0xa   :  { %584 = vsyncadd [#allocation2], 4294967280 }
   0xb   :  { %11 = sfence }
   0xc   :  { %12 = vsyncpa [#allocation5], 0 }
   0xd   :  { %13 = vsyncpa [#allocation8], 0 }
   0xe   :  { %14 = vsyncpa [#allocation6], 0 }
   0xf   :  { %16 = vsyncpa [#allocation6 + $0x1], 0  ;;  %s659_s22 = smov 0   ;;  %s661_s23 = smov 0  }
  0x10   :  { %s663_s24 = smov 0   ;;  %s665_s25 = smov 0  }
  0x11   :  { %s667_s26 = smov 0   ;;  %s669_s27 = smov 0  }
  0x12 LB: > { %s370_s0 = sadd.s32 4294967295, %s619_s27   ;;  %s371_s28 = sadd.s32 4294967294, %s619_s27   ;;  %s619_s27 = sphi %s669_s27, %s22_s27   ;;  %s615_s26 = sphi %s667_s26, %s900_s26   ;;  %s611_s25 = sphi %s665_s25, %s899_s25   ;;  %s607_s24 = sphi %s663_s24, %s898_s24   ;;  %s603_s23 = sphi %s661_s23, %s897_s23   ;;  %s599_s22 = sphi %s659_s22, %s896_s22  }
  0x13   : > { %s34_s29 = sadd.s32 1, %s615_s26  ;;  %s85_s30 = sadd.s32 1, %s607_s24 }
  0x14   : > { %p36_p3 = scmp.ge.s32.totalorder %s34_s29, 2  ;;  %p95_p4 = scmp.ne.s32.totalorder %s607_s24, %s603_s23 }
  0x15   : > { %p96_p5 = scmp.eq.s32.totalorder %s370_s0, 1  ;;  %p101_p6 = scmp.ne.s32.totalorder %s603_s23, %s599_s22 }
  0x16   : > { %s902_s29 = smov (%p36_p3, %s34_s29), 0  ;;  %p102_p8 = scmp.eq.s32.totalorder %s371_s28, 1 }
  0x17   : > { %p699_p7 = por %p96_p5, %p95_p4  ;;  %s82_s5 = ssub.s32 %s615_s26, %s902_s29 }
  0x18   : > { %p372_p9 = scmp.ge.s32.totalorder %s619_s27, 1  ;;  %p83_p10 = scmp.eq.s32.totalorder %s82_s5, 0 }
  0x19   : > { %s887_s4 = scalar_select %p699_p7, 1, 0 }
  0x1a   : > { %p706_p11 = por %p102_p8, %p101_p6  ;;  %p109_p12 = scmp.lt.s32.totalorder %s619_s27, 3 }
  0x1b   : > { %s712_s7 = scalar_select %p83_p10, %s607_s24, %s85_s30  }
  0x1c   : > { %s888_s6 = scalar_select %p706_p11, 1, 0 }
  0x1d   : > { %p714_p13 = pnand %p372_p9, %p109_p12  ;;  %p718_p0 = scmp.eq.s32.totalorder %s370_s0, 0 }
  0x1e   : > { %s622_s10 = smov [#allocation4]   ;;  %s623_s13 = smov [#allocation7]  }
  0x1f   : > { %s889_s8 = scalar_select %p714_p13, 1, 0 }
  0x20   : > { %s890_s9 = scalar_select %p718_p0, 1, 0 }
  0x21   : > { %p396_p1 = pneg %p714_p13  ;;  %s121_s11 = sshll.u32 %s622_s10, 4  ;;  %s122_s11 = int_to_ptr.vmem [resolvable:$true] %s121_s11 }
  0x22   : > { %s134_s14 = sshll.u32 %s623_s13, 4  ;;  %s475_s17 = scalar_lea.hbm %s880_s1, 4096  ;;  %s730_s14 = int_to_ptr.vmem [resolvable:$true] %s134_s14 }
  0x23   : > { %p726_p2 = pnand %p718_p0, %p396_p1  ;;  %p476_p3 = scmp.ne.s32.totalorder %s880_s1, %s475_s17 }
  0x24   : > { %p482_p8 = scmp.lt.u32.totalorder %s475_s17, %s880_s1 }
  0x25   : > { %p477_p4 = pneg %p726_p2 }
  0x27   : > { %p478_p5 = pnand %p477_p4, %p476_p3 }
  0x29   : > { %p479_p6 = pneg %p478_p5 }
  0x2b   : > { %p484_p9 = pnand %p482_p8, %p479_p6 }
  0x2d   : > { %487 = shalt.err (!%p484_p9)
}
  0x2e   : > { %s488_s0 = scalar_lea.vmem %s122_s11, 4096  ;;  %p496_p11 = scmp.lt.s32.totalorder %s122_s11, %s122_s11 }
  0x2f   : > { %p489_p10 = scmp.ne.s32.totalorder %s122_s11, %s488_s0  ;;  %p497_p7 = scmp.lt.s32.totalorder %s488_s0, %s488_s0 }
  0x31   : > { %p491_p12 = pnand %p489_p10, %p477_p4  ;;  %p498_p0 = por %p497_p7, %p496_p11 }
  0x33   : > { %p492_p1 = pneg %p491_p12 }
  0x35   : > { %p499_p13 = pnand %p498_p0, %p492_p1 }
  0x37   : > { %502 = shalt.err (!%p499_p13)
}
  0x38   : > { %s624_s28 = smov 128   ;;  %s625_s30 = smov 8  }
  0x39   : > { %399 = dma.hbm_to_vmem [thread:$0]  (!%p726_p2), %s880_s1, 4096, %s122_s11, [#allocation5], %s624_s28, %s624_s28, %s625_s30  }
  0x3a   : > { %s503_s16 = scalar_lea.hbm %s881_s2, 4096 }
  0x3b   : > { %p504_p3 = scmp.ne.s32.totalorder %s881_s2, %s503_s16  ;;  %p510_p13 = scmp.lt.u32.totalorder %s503_s16, %s881_s2 }
  0x3d   : > { %p506_p7 = pnand %p504_p3, %p477_p4 }
  0x3f   : > { %p507_p11 = pneg %p506_p7 }
  0x41   : > { %p512_p0 = pnand %p510_p13, %p507_p11 }
  0x43   : > { %515 = shalt.err (!%p512_p0)
}
  0x44   : > { %s516_s11 = scalar_lea.vmem %s730_s14, 4096  ;;  %p524_p9 = scmp.lt.s32.totalorder %s730_s14, %s730_s14 }
  0x45   : > { %p517_p5 = scmp.ne.s32.totalorder %s730_s14, %s516_s11  ;;  %p525_p10 = scmp.lt.s32.totalorder %s516_s11, %s516_s11 }
  0x47   : > { %p519_p6 = pnand %p517_p5, %p477_p4  ;;  %p526_p12 = por %p525_p10, %p524_p9 }
  0x49   : > { %p520_p8 = pneg %p519_p6 }
  0x4b   : > { %p527_p1 = pnand %p526_p12, %p520_p8 }
  0x4d   : > { %530 = shalt.err (!%p527_p1)
}
  0x4e   : > { %402 = dma.hbm_to_vmem [thread:$0]  (!%p726_p2), %s881_s2, 4096, %s730_s14, [#allocation8], %s624_s28, %s624_s28, %s625_s30  }
  0x4f   : > { %p892_p3 = scmp.ne.s32.totalorder %s889_s8, 0 }
  0x50   : > { %p893_p7 = scmp.ne.s32.totalorder (!%p892_p3), %s890_s9, 0 }
  0x51   : > { %150 = sbr.rel (%p892_p3) target bundleno = 154 (0x9a), region = 28 }
  0x58   : > { %586 = dma.done.wait (%p893_p7), [#allocation5], 4096  }
  0x59   : > { %588 = vsyncadd (%p893_p7), [#allocation5], 4294963200 }
  0x5a   : > { %590 = dma.done.wait (%p893_p7), [#allocation8], 4096  }
  0x5b   : > { %592 = vsyncadd (%p893_p7), [#allocation8], 4294963200  ;;  %s168_s12 = sand.u32 1, %s603_s23   ;;  %s791_s14 = sshll.u32 %s611_s25, 3 }
  0x5c   : > { %s378_s8 = sshll.u32 %s168_s12, 3  ;;  %p380_p2 = scmp.ne.s32.totalorder %s611_s25, 0 }
  0x5d   : > { %s795_s28 = scalar_lea.vmem [#allocation9], %s378_s8  ;;  %s179_s9 = sld [smem:[#allocation3 + %s791_s14]] (!%p380_p2) }
  0x5e   : > { %178 = sbr.rel (%p380_p2) target bundleno = 111 (0x6f), region = 40  ;;  %s183_s30 = sadd.s32 (!%p380_p2), 1, %s791_s14 }
  0x5f   : > { %s184_s5 = sld [smem:[#allocation3 + %s183_s30]] (!%p380_p2)  ;;  %s188_s10 = sadd.s32 (!%p380_p2), 2, %s791_s14 }
  0x60   : > { %s189_s13 = sld [smem:[#allocation3 + %s188_s10]] (!%p380_p2)  ;;  %s193_s15 = sadd.s32 (!%p380_p2), 3, %s791_s14 }
  0x61   : > { %s194_s16 = sld [smem:[#allocation3 + %s193_s15]] (!%p380_p2)  ;;  %s198_s17 = sadd.s32 (!%p380_p2), 4, %s791_s14 }
  0x62   : > { %s199_s18 = sld [smem:[#allocation3 + %s198_s17]] (!%p380_p2)  ;;  %s203_s19 = sadd.s32 (!%p380_p2), 5, %s791_s14 }
  0x63   : > { %s204_s20 = sld [smem:[#allocation3 + %s203_s19]] (!%p380_p2)  ;;  %s208_s11 = sadd.s32 (!%p380_p2), 6, %s791_s14 }
  0x64   : > { %s209_s21 = sld [smem:[#allocation3 + %s208_s11]] (!%p380_p2)  ;;  %s180_s0 = scalar_lea.vmem (!%p380_p2), [#allocation4], %s179_s9 }
  0x65   : > { %v181_v0 = vld [vmem:[%s180_s0] sm:$0x1]  ;;  %s213_s8 = sadd.s32 7, %s791_s14  ;;  %s185_s30 = scalar_lea.vmem [#allocation4], %s184_s5 }
  0x66   : > { %182 = vst [vmem:[%s795_s28] sm:$0x1] %v181_v0  ;;  %v186_v1 = vld [vmem:[%s185_s30] sm:$0x1]  ;;  %s214_s10 = sld [smem:[#allocation3 + %s213_s8]]  ;;  %s190_s15 = scalar_lea.vmem [#allocation4], %s189_s13 }
  0x67   : > { %187 = vst [vmem:[%s795_s28 + $0x1] sm:$0x1] %v186_v1  ;;  %v191_v2 = vld [vmem:[%s190_s15] sm:$0x1]  ;;  %s195_s17 = scalar_lea.vmem [#allocation4], %s194_s16 }
  0x68   : > { %192 = vst [vmem:[%s795_s28 + $0x2] sm:$0x1] %v191_v2  ;;  %v196_v3 = vld [vmem:[%s195_s17] sm:$0x1]  ;;  %s200_s19 = scalar_lea.vmem [#allocation4], %s199_s18 }
  0x69   : > { %197 = vst [vmem:[%s795_s28 + $0x3] sm:$0x1] %v196_v3  ;;  %v201_v4 = vld [vmem:[%s200_s19] sm:$0x1]  ;;  %s205_s9 = scalar_lea.vmem [#allocation4], %s204_s20 }
  0x6a   : > { %202 = vst [vmem:[%s795_s28 + $0x4] sm:$0x1] %v201_v4  ;;  %v206_v5 = vld [vmem:[%s205_s9] sm:$0x1]  ;;  %s210_s11 = scalar_lea.vmem [#allocation4], %s209_s21 }
  0x6b   : > { %207 = vst [vmem:[%s795_s28 + $0x5] sm:$0x1] %v206_v5  ;;  %v211_v6 = vld [vmem:[%s210_s11] sm:$0x1] }
  0x6c   : > { %212 = vst [vmem:[%s795_s28 + $0x6] sm:$0x1] %v211_v6  ;;  %s215_s5 = scalar_lea.vmem [#allocation4], %s214_s10 }
  0x6d   : > { %v216_v7 = vld [vmem:[%s215_s5] sm:$0x1] }
  0x6e   : > { %217 = vst [vmem:[%s795_s28 + $0x7] sm:$0x1] %v216_v7 }
  0x6f PF: > { %p381_p4 = scmp.ne.s32.totalorder %s611_s25, 1 }
  0x70   : > { %s222_s13 = sld [smem:[#allocation3 + %s791_s14]] (!%p381_p4)  ;;  %s226_s16 = sadd.s32 (!%p381_p4), 1, %s791_s14 }
  0x71   : > { %221 = sbr.rel (%p381_p4) target bundleno = 129 (0x81), region = 44  ;;  %s227_s18 = sld [smem:[#allocation3 + %s226_s16]] (!%p381_p4) }
  0x72   : > { %s231_s20 = sadd.s32 (!%p381_p4), 2, %s791_s14  ;;  %s236_s0 = sadd.s32 (!%p381_p4), 3, %s791_s14 }
  0x73   : > { %s232_s21 = sld [smem:[#allocation3 + %s231_s20]] (!%p381_p4)  ;;  %s241_s30 = sadd.s32 (!%p381_p4), 4, %s791_s14 }
  0x74   : > { %s237_s8 = sld [smem:[#allocation3 + %s236_s0]] (!%p381_p4)  ;;  %s246_s15 = sadd.s32 (!%p381_p4), 5, %s791_s14 }
  0x75   : > { %s242_s10 = sld [smem:[#allocation3 + %s241_s30]] (!%p381_p4)  ;;  %s251_s19 = sadd.s32 (!%p381_p4), 6, %s791_s14 }
  0x76   : > { %s247_s17 = sld [smem:[#allocation3 + %s246_s15]] (!%p381_p4)  ;;  %s223_s11 = scalar_lea.vmem (!%p381_p4), [#allocation7], %s222_s13 }
  0x77   : > { %s252_s9 = sld [smem:[#allocation3 + %s251_s19]] (!%p381_p4)  ;;  %v224_v8 = vld [vmem:[%s223_s11] sm:$0x1] (!%p381_p4)  ;;  %s256_s5 = sadd.s32 (!%p381_p4), 7, %s791_s14 }
  0x78   : > { %225 = vst [vmem:[%s795_s28] sm:$0x1] %v224_v8  ;;  %s228_s16 = scalar_lea.vmem [#allocation7], %s227_s18  ;;  %s257_s20 = sld [smem:[#allocation3 + %s256_s5]] }
  0x79   : > { %v229_v9 = vld [vmem:[%s228_s16] sm:$0x1]  ;;  %s233_s0 = scalar_lea.vmem [#allocation7], %s232_s21 }
  0x7a   : > { %230 = vst [vmem:[%s795_s28 + $0x1] sm:$0x1] %v229_v9  ;;  %v234_v10 = vld [vmem:[%s233_s0] sm:$0x1]  ;;  %s238_s30 = scalar_lea.vmem [#allocation7], %s237_s8 }
  0x7b   : > { %235 = vst [vmem:[%s795_s28 + $0x2] sm:$0x1] %v234_v10  ;;  %v239_v11 = vld [vmem:[%s238_s30] sm:$0x1]  ;;  %s243_s15 = scalar_lea.vmem [#allocation7], %s242_s10 }
  0x7c   : > { %240 = vst [vmem:[%s795_s28 + $0x3] sm:$0x1] %v239_v11  ;;  %v244_v12 = vld [vmem:[%s243_s15] sm:$0x1]  ;;  %s248_s13 = scalar_lea.vmem [#allocation7], %s247_s17 }
  0x7d   : > { %245 = vst [vmem:[%s795_s28 + $0x4] sm:$0x1] %v244_v12  ;;  %v249_v13 = vld [vmem:[%s248_s13] sm:$0x1]  ;;  %s253_s14 = scalar_lea.vmem [#allocation7], %s252_s9 }
  0x7e   : > { %250 = vst [vmem:[%s795_s28 + $0x5] sm:$0x1] %v249_v13  ;;  %v254_v14 = vld [vmem:[%s253_s14] sm:$0x1]  ;;  %s258_s18 = scalar_lea.vmem [#allocation7], %s257_s20 }
  0x7f   : > { %255 = vst [vmem:[%s795_s28 + $0x6] sm:$0x1] %v254_v14  ;;  %v259_v15 = vld [vmem:[%s258_s18] sm:$0x1] }
  0x80   : > { %260 = vst [vmem:[%s795_s28 + $0x7] sm:$0x1] %v259_v15 }
  0x81 PF: > { %s383_s21 = sshll.u32 %s611_s25, 7  ;;  %s276_s17 = sshll.u32 %s795_s28, 4  ;;  %s277_s17 = int_to_ptr.vmem [resolvable:$true] %s276_s17 }
  0x82   : > { %s835_s10 = scalar_lea.hbm %s882_s3, %s383_s21  ;;  %s262_s9 = scalar_lea.sflag [#allocation6], %s168_s12 }
  0x83   : > { %s531_s11 = scalar_lea.vmem %s277_s17, 128  ;;  %p894_p13 = scmp.ne.s32.totalorder %s887_s4, 0 }
  0x84   : > { %p532_p11 = scmp.ne.s32.totalorder %s277_s17, %s531_s11  ;;  %s626_s5 = smov [#allocation9]  }
  0x85   : > { %s535_s16 = sshll.u32 %s626_s5, 4  ;;  %s536_s16 = int_to_ptr.vmem [resolvable:$false] %s535_s16 }
  0x86   : > { %p533_p0 = pnand %p532_p11, %p894_p13  ;;  %s537_s20 = scalar_lea.vmem %s536_s16, 256 }
  0x87   : > { %p538_p6 = scmp.lt.s32.totalorder %s277_s17, %s536_s16  ;;  %p539_p8 = scmp.lt.s32.totalorder %s537_s20, %s531_s11 }
  0x88   : > { %p534_p5 = pneg %p533_p0 }
  0x89   : > { %p540_p9 = por %p539_p8, %p538_p6 }
  0x8b   : > { %p541_p10 = pnand %p540_p9, %p534_p5 }
  0x8d   : > { %544 = shalt.err (!%p541_p10)
}
  0x8e   : > { %s545_s25 = scalar_lea.hbm %s835_s10, 128  ;;  %s549_s0 = scalar_lea.hbm %s882_s3, 256 }
  0x8f   : > { %p546_p12 = scmp.ne.s32.totalorder %s835_s10, %s545_s25  ;;  %p550_p7 = scmp.lt.u32.totalorder %s835_s10, %s882_s3 }
  0x90   : > { %p551_p2 = scmp.lt.u32.totalorder %s549_s0, %s545_s25  ;;  %p553_p11 = scmp.lt.u32.totalorder %s545_s25, %s835_s10 }
  0x91   : > { %p547_p1 = pnand %p546_p12, %p894_p13 }
  0x92   : > { %p552_p4 = por %p551_p2, %p550_p7 }
  0x93   : > { %p548_p3 = pneg %p547_p1 }
  0x94   : > { %p554_p0 = por %p553_p11, %p552_p4 }
  0x96   : > { %p555_p5 = pnand %p554_p0, %p548_p3 }
  0x98   : > { %558 = shalt.err (!%p555_p5)
}
  0x99   : > { %394 = dma.vmem_to_hbm [thread:$0]  (%p894_p13), %s277_s17, 128, %s835_s10, %s262_s9  }
  0x9a PF: > { %p411_p6 = scmp.ge.s32.totalorder %s619_s27, 2  ;;  %s288_s13 = sand.u32 1, %s599_s22  }
  0x9b   : > { %p895_p8 = scmp.ne.s32.totalorder %s888_s6, 0  ;;  %s289_s14 = scalar_lea.sflag [#allocation6], %s288_s13 }
  0x9d   : > { %p404_p9 = pnand %p411_p6, %p895_p8 }
  0x9f   : > { %594 = dma.done.wait (!%p404_p9), %s289_s14, 128  }
  0xa0   : > { %596 = vsyncadd (!%p404_p9), %s289_s14, 4294967168  ;;  %s22_s27 = sadd.s32 1, %s619_s27   ;;  %s896_s22 = smov %s603_s23 }
  0xa1   : > { %p19_p10 = scmp.ge.s32.totalorder %s22_s27, 4   ;;  %s897_s23 = smov %s607_s24 }
  0xa2   : > { %s898_s24 = smov %s712_s7  ;;  %s899_s25 = smov %s615_s26 }
  0xa3   : > { %s900_s26 = smov %s902_s29  ;;  %21 = sbr.rel (!%p19_p10) target bundleno = 18 (0x12), region = 93 }
  0xaa   :  { %294 = vsyncpa [#allocation5], 1 }
  0xab   :  { %296 = vsyncpa [#allocation5 + $0x1], 1 }
  0xac   :  { %297 = vsyncpa [#allocation8], 1 }
  0xad   :  { %298 = vsyncpa [#allocation6], 1 }
  0xae   :  { %300 = vsyncpa [#allocation6 + $0x1], 1 }

</bundles_post_ra>
